<compile_context>
chip_gen: v5e
topology: v5e:2x2
jax: 0.10.0
libtpu: 0.0.40
codegen_flags: <defaults>
</compile_context>

<pallas_src>
import collections
import functools

import jax
import jax.numpy as jnp
import numpy as np
from jax.experimental import pallas as pl
from jax.experimental.pallas import tpu as pltpu


def _round_up(x, m):
    return (x + m - 1) // m * m


@functools.lru_cache(maxsize=None)
def _windowed_dft_basis(n_fft, n_bins, n_pad, k_pad):
    """(n_pad, 2*k_pad) bf16 basis: diag(hann / ||hann||) @ [cos | sin]."""
    n = np.arange(n_fft, dtype=np.float64)
    window = 0.5 - 0.5 * np.cos(2.0 * np.pi * n / n_fft)      # periodic Hann
    scale = window / np.sqrt(np.sum(window * window))          # fold 1/||w||
    k = np.arange(n_bins, dtype=np.float64)
    ang = 2.0 * np.pi * np.outer(n, k) / n_fft
    basis = np.zeros((n_pad, 2 * k_pad), dtype=np.float32)
    basis[:n_fft, :n_bins] = np.cos(ang) * scale[:, None]
    basis[:n_fft, k_pad:k_pad + n_bins] = np.sin(ang) * scale[:, None]
    return jnp.asarray(basis, dtype=jnp.bfloat16)


def _sss_kernel(xt_ref, xp_ref, basis_ref, o_ref, *, k_pad, eps):
    """One (TM, n_pad) frame tile of one batch element per grid step.

    o_ref is the resident (3, k_pad) per-batch accumulator:
      row 0: sum over frames of (S_t - S_p)^2   (per bin)
      row 1: sum over frames of (S_t + S_p)^2   (per bin)
      row 2: sum over frames of |log(S_t/S_p)|  (per bin)
    """
    m = pl.program_id(1)

    @pl.when(m == 0)
    def _init():
        o_ref[...] = jnp.zeros_like(o_ref)

    basis = basis_ref[...]                                  # (n_pad, 2*k_pad) bf16

    def spectrogram(x_ref):
        # One fused MXU matmul per signal: re|im in one (TM, 2*k_pad) slab.
        r = jnp.dot(x_ref[...], basis,
                    preferred_element_type=jnp.float32)     # f32 accumulate
        re = r[:, :k_pad]                                    # lane-tile aligned
        im = r[:, k_pad:]
        return jnp.sqrt(re * re + im * im) + eps             # (TM, k_pad) f32

    s_t = spectrogram(xt_ref)
    s_p = spectrogram(xp_ref)

    diff = s_t - s_p
    ssum = s_t + s_p
    # One log + one divide per element (was two logs).  On padded rows / bins
    # s_t == s_p == eps, so the ratio is 1 and the term vanishes.
    labs = jnp.abs(jnp.log(s_t / s_p))

    # Sublane reduction over the frame tile -> (1, k_pad) lane-partials,
    # accumulated into the resident output block.  Final lane reduce + the
    # padded-row correction for the (S_t+S_p)^2 term happen on the host.
    o_ref[0:1, :] += jnp.sum(diff * diff, axis=0, keepdims=True)
    o_ref[1:2, :] += jnp.sum(ssum * ssum, axis=0, keepdims=True)
    o_ref[2:3, :] += jnp.sum(labs, axis=0, keepdims=True)


def sss_loss(x_true, x_pred, n_fft, alpha=1.0, overlap=0.0, eps=1e-7):
    """Single-scale spectral loss (torchaudio Spectrogram: power=1,
    normalized=True ('window'), center=False, periodic Hann window)."""
    B, T = x_true.shape
    hop = int(n_fft * (1 - overlap))
    n_frames = (T - n_fft) // hop + 1
    n_bins = n_fft // 2 + 1

    n_pad = _round_up(n_fft, 128)        # lane alignment (contraction dim)
    k_pad = _round_up(n_bins, 128)       # lane alignment (output bins)

    # Frame-tile size: big enough for MXU amortization, small enough for
    # v7x's 64 MiB VMEM (with the basis resident + double-buffered inputs),
    # and chosen to minimize zero-frame padding on the last tile.
    tm_target = 512 if n_pad <= 1024 else 256
    n_mtiles = max(1, -(-n_frames // tm_target))
    tm = _round_up(-(-n_frames // n_mtiles), 8)   # sublane-aligned tile
    f_pad = tm * n_mtiles

    if hop == n_fft:
        # overlap == 0: framing is a pure reshape, no gather / extra HBM copy.
        frames_t = x_true[:, :n_frames * n_fft].reshape(B, n_frames, n_fft)
        frames_p = x_pred[:, :n_frames * n_fft].reshape(B, n_frames, n_fft)
    else:
        # TODO(synk): for overlap > 0, move framing into the kernel (strided
        # pl.ds over the raw (B, T) signal) to avoid this duplicated gather.
        idx = jnp.arange(n_frames)[:, None] * hop + jnp.arange(n_fft)[None, :]
        frames_t = x_true[:, idx]
        frames_p = x_pred[:, idx]

    def prep(frames):
        fr = frames.astype(jnp.bfloat16)
        return jnp.pad(fr, ((0, 0), (0, f_pad - n_frames), (0, n_pad - n_fft)))

    xt = prep(frames_t)
    xp = prep(frames_p)
    basis = _windowed_dft_basis(n_fft, n_bins, n_pad, k_pad)

    kernel = functools.partial(_sss_kernel, k_pad=k_pad, eps=eps)

    flops = 2 * (2 * B * f_pad * n_pad * (2 * k_pad))        # two matmuls/step
    transcendentals = 4 * B * f_pad * k_pad                   # sqrt/log/div
    bytes_accessed = 2 * (xt.size + xp.size + basis.size) + B * 3 * k_pad * 4

    out = pl.pallas_call(
        kernel,
        out_shape=jax.ShapeDtypeStruct((B, 3, k_pad), jnp.float32),
        grid=(B, n_mtiles),
        in_specs=[
            pl.BlockSpec((None, tm, n_pad), lambda b, m: (b, m, 0)),
            pl.BlockSpec((None, tm, n_pad), lambda b, m: (b, m, 0)),
            pl.BlockSpec((n_pad, 2 * k_pad), lambda b, m: (0, 0)),   # resident
        ],
        out_specs=pl.BlockSpec((None, 3, k_pad), lambda b, m: (b, 0, 0)),
        compiler_params=pltpu.CompilerParams(
            dimension_semantics=("parallel", "arbitrary"),
            vmem_limit_bytes=48 * 1024 * 1024),
        cost_estimate=pl.CostEstimate(flops=int(flops),
                                      transcendentals=int(transcendentals),
                                      bytes_accessed=int(bytes_accessed)),
    )(xt, xp, basis)

    # Host epilogue: slice off padded bins exactly, correct the padded-row
    # contribution to the (S_t+S_p)^2 term, then combine.
    valid = out[:, :, :n_bins]                               # (B, 3, n_bins)
    d = jnp.sum(valid[:, 0, :], axis=-1)                     # (B,)
    s_raw = jnp.sum(valid[:, 1, :], axis=-1)
    l = jnp.sum(valid[:, 2, :], axis=-1)
    pad_corr = (f_pad - n_frames) * n_bins * (2.0 * eps) ** 2
    s = jnp.maximum(s_raw - pad_corr, eps * eps)

    converge_term = jnp.mean(jnp.sqrt(d) / jnp.sqrt(s))
    log_term = jnp.sum(l) / (B * n_frames * n_bins)
    return converge_term + alpha * log_term


def rss_loss(x_pred, x_true, *, fft_min, fft_max, n_scale, key,
             alpha=1.0, overlap=0.0, eps=1e-7):
    """Random-scale spectral loss: average of n_scale randomly sized SSS losses."""
    # torch.randint(fft_min, fft_max, (n_scale,)) equivalent; n_fft must be
    # static (it sets shapes), so the draw is materialized on host.  Scales
    # that drew the same n_fft share one pallas_call, weighted by their count.
    n_ffts = np.asarray(
        jax.random.randint(key, (n_scale,), fft_min, fft_max)).tolist()
    value = jnp.float32(0.0)
    for n_fft, count in collections.Counter(int(n) for n in n_ffts).items():
        value = value + count * sss_loss(x_true, x_pred, n_fft, alpha=alpha,
                                         overlap=overlap, eps=eps)
    return value / n_scale


if __name__ == "__main__":
    key = jax.random.PRNGKey(0)
    k_true, k_pred, k_fft = jax.random.split(key, 3)

    B, T = 2, 512
    x_true = jax.random.normal(k_true, (B, T), dtype=jnp.float32)
    x_pred = jax.random.normal(k_pred, (B, T), dtype=jnp.float32)

    loss = rss_loss(x_pred, x_true, fft_min=16, fft_max=32, n_scale=3,
                    key=k_fft)
    jax.block_until_ready(loss)
    print("KERNEL_OK")
</pallas_src>

<mosaic_0001>
module attributes {stable_mosaic.version = 11 : i64} {
  func.func @_sss_kernel(%arg0: i32, %arg1: i32, %arg2: memref<1x32x128xbf16, #tpu.memory_space<vmem>>, %arg3: memref<1x32x128xbf16, #tpu.memory_space<vmem>>, %arg4: memref<128x256xbf16, #tpu.memory_space<vmem>>, %arg5: memref<1x3x128xf32, #tpu.memory_space<vmem>>) attributes {dimension_semantics = [#tpu.dimension_semantics<parallel>, #tpu.dimension_semantics<arbitrary>], iteration_bounds = array<i64: 2, 1>, scalar_prefetch = 0 : i64, scratch_operands = 0 : i64, tpu.core_type = #tpu.core_type<tc>, window_params = [{transform_indices = @transform_0, window_bounds = array<i64: 1, 32, 128>}, {transform_indices = @transform_1, window_bounds = array<i64: 1, 32, 128>}, {pipeline_mode = #tpu.pipeline_mode<synchronous>, transform_indices = @transform_2, window_bounds = array<i64: 128, 256>}, {transform_indices = @transform_3, window_bounds = array<i64: 1, 3, 128>}]} {
    %c0_i32 = arith.constant 0 : i32
    %0 = arith.cmpi eq, %arg1, %c0_i32 : i32
    %1 = arith.extui %0 : i1 to i32
    %c0_i32_0 = arith.constant 0 : i32
    %2 = arith.cmpi ne, %1, %c0_i32_0 : i32
    scf.if %2 {
      %cst_30 = arith.constant 0.000000e+00 : f32
      %57 = vector.broadcast %cst_30 : f32 to vector<3x128xf32>
      %c0_31 = arith.constant 0 : index
      %c0_32 = arith.constant 0 : index
      %c0_33 = arith.constant 0 : index
      %58 = vector.load %arg5[%c0_31, %c0_32, %c0_33] : memref<1x3x128xf32, #tpu.memory_space<vmem>>, vector<1x3x128xf32>
      %59 = vector.shape_cast %58 : vector<1x3x128xf32> to vector<3x128xf32>
      %60 = vector.shape_cast %57 : vector<3x128xf32> to vector<1x3x128xf32>
      tpu.vector_store %arg5[%c0_31, %c0_32, %c0_33], %60 {strides = array<i32>} : memref<1x3x128xf32, #tpu.memory_space<vmem>>, vector<1x3x128xf32>,
    } else {
    }
    %c0 = arith.constant 0 : index
    %c0_1 = arith.constant 0 : index
    %3 = vector.load %arg4[%c0, %c0_1] : memref<128x256xbf16, #tpu.memory_space<vmem>>, vector<128x256xbf16>
    %c0_2 = arith.constant 0 : index
    %c0_3 = arith.constant 0 : index
    %c0_4 = arith.constant 0 : index
    %4 = vector.load %arg2[%c0_2, %c0_3, %c0_4] : memref<1x32x128xbf16, #tpu.memory_space<vmem>>, vector<1x32x128xbf16>
    %5 = vector.shape_cast %4 : vector<1x32x128xbf16> to vector<32x128xbf16>
    %cst = arith.constant dense<0.000000e+00> : vector<32x256xf32>
    %6 = tpu.matmul %5, %3, %cst {dimension_numbers = #tpu.dot_dimension_numbers<[1], [0], [0], [1], [0, 0, 1, 1], [], []>} : vector<32x128xbf16>, vector<128x256xbf16>, vector<32x256xf32> -> vector<32x256xf32>
    %7 = vector.extract_strided_slice %6 {offsets = [0, 0], sizes = [32, 128], strides = [1, 1]} : vector<32x256xf32> to vector<32x128xf32>
    %8 = vector.extract_strided_slice %6 {offsets = [0, 128], sizes = [32, 128], strides = [1, 1]} : vector<32x256xf32> to vector<32x128xf32>
    %9 = arith.mulf %7, %7 : vector<32x128xf32>
    %10 = arith.mulf %8, %8 : vector<32x128xf32>
    %11 = arith.addf %9, %10 : vector<32x128xf32>
    %12 = math.sqrt %11 : vector<32x128xf32>
    %cst_5 = arith.constant 1.000000e-07 : f32
    %13 = vector.broadcast %cst_5 : f32 to vector<32x128xf32>
    %14 = arith.addf %12, %13 : vector<32x128xf32>
    %c0_6 = arith.constant 0 : index
    %c0_7 = arith.constant 0 : index
    %c0_8 = arith.constant 0 : index
    %15 = vector.load %arg3[%c0_6, %c0_7, %c0_8] : memref<1x32x128xbf16, #tpu.memory_space<vmem>>, vector<1x32x128xbf16>
    %16 = vector.shape_cast %15 : vector<1x32x128xbf16> to vector<32x128xbf16>
    %cst_9 = arith.constant dense<0.000000e+00> : vector<32x256xf32>
    %17 = tpu.matmul %16, %3, %cst_9 {dimension_numbers = #tpu.dot_dimension_numbers<[1], [0], [0], [1], [0, 0, 1, 1], [], []>} : vector<32x128xbf16>, vector<128x256xbf16>, vector<32x256xf32> -> vector<32x256xf32>
    %18 = vector.extract_strided_slice %17 {offsets = [0, 0], sizes = [32, 128], strides = [1, 1]} : vector<32x256xf32> to vector<32x128xf32>
    %19 = vector.extract_strided_slice %17 {offsets = [0, 128], sizes = [32, 128], strides = [1, 1]} : vector<32x256xf32> to vector<32x128xf32>
    %20 = arith.mulf %18, %18 : vector<32x128xf32>
    %21 = arith.mulf %19, %19 : vector<32x128xf32>
    %22 = arith.addf %20, %21 : vector<32x128xf32>
    %23 = math.sqrt %22 : vector<32x128xf32>
    %cst_10 = arith.constant 1.000000e-07 : f32
    %24 = vector.broadcast %cst_10 : f32 to vector<32x128xf32>
    %25 = arith.addf %23, %24 : vector<32x128xf32>
    %26 = arith.subf %14, %25 : vector<32x128xf32>
    %27 = arith.addf %14, %25 : vector<32x128xf32>
    %28 = arith.divf %14, %25 : vector<32x128xf32>
    %29 = math.log %28 : vector<32x128xf32>
    %30 = math.absf %29 : vector<32x128xf32>
    %c0_11 = arith.constant 0 : index
    %c0_12 = arith.constant 0 : index
    %c0_13 = arith.constant 0 : index
    %31 = vector.load %arg5[%c0_11, %c0_12, %c0_13] : memref<1x3x128xf32, #tpu.memory_space<vmem>>, vector<1x1x128xf32>
    %32 = vector.shape_cast %31 : vector<1x1x128xf32> to vector<1x128xf32>
    %33 = arith.mulf %26, %26 : vector<32x128xf32>
    %cst_14 = arith.constant dense<0.000000e+00> : vector<128xf32>
    %34 = vector.multi_reduction <add>, %33, %cst_14 [0] : vector<32x128xf32> to vector<128xf32>
    %35 = vector.shape_cast %34 : vector<128xf32> to vector<1x128xf32>
    %36 = arith.addf %32, %35 : vector<1x128xf32>
    %c0_15 = arith.constant 0 : index
    %c0_16 = arith.constant 0 : index
    %c0_17 = arith.constant 0 : index
    %37 = vector.load %arg5[%c0_15, %c0_16, %c0_17] : memref<1x3x128xf32, #tpu.memory_space<vmem>>, vector<1x1x128xf32>
    %38 = vector.shape_cast %37 : vector<1x1x128xf32> to vector<1x128xf32>
    %39 = vector.shape_cast %36 : vector<1x128xf32> to vector<1x1x128xf32>
    tpu.vector_store %arg5[%c0_15, %c0_16, %c0_17], %39 {strides = array<i32>} : memref<1x3x128xf32, #tpu.memory_space<vmem>>, vector<1x1x128xf32>,
    %c0_18 = arith.constant 0 : index
    %c1 = arith.constant 1 : index
    %c0_19 = arith.constant 0 : index
    %40 = vector.load %arg5[%c0_18, %c1, %c0_19] : memref<1x3x128xf32, #tpu.memory_space<vmem>>, vector<1x1x128xf32>
    %41 = vector.shape_cast %40 : vector<1x1x128xf32> to vector<1x128xf32>
    %42 = arith.mulf %27, %27 : vector<32x128xf32>
    %cst_20 = arith.constant dense<0.000000e+00> : vector<128xf32>
    %43 = vector.multi_reduction <add>, %42, %cst_20 [0] : vector<32x128xf32> to vector<128xf32>
    %44 = vector.shape_cast %43 : vector<128xf32> to vector<1x128xf32>
    %45 = arith.addf %41, %44 : vector<1x128xf32>
    %c0_21 = arith.constant 0 : index
    %c1_22 = arith.constant 1 : index
    %c0_23 = arith.constant 0 : index
    %46 = vector.load %arg5[%c0_21, %c1_22, %c0_23] : memref<1x3x128xf32, #tpu.memory_space<vmem>>, vector<1x1x128xf32>
    %47 = vector.shape_cast %46 : vector<1x1x128xf32> to vector<1x128xf32>
    %48 = vector.shape_cast %45 : vector<1x128xf32> to vector<1x1x128xf32>
    tpu.vector_store %arg5[%c0_21, %c1_22, %c0_23], %48 {strides = array<i32>} : memref<1x3x128xf32, #tpu.memory_space<vmem>>, vector<1x1x128xf32>,
    %c0_24 = arith.constant 0 : index
    %c2 = arith.constant 2 : index
    %c0_25 = arith.constant 0 : index
    %49 = vector.load %arg5[%c0_24, %c2, %c0_25] : memref<1x3x128xf32, #tpu.memory_space<vmem>>, vector<1x1x128xf32>
    %50 = vector.shape_cast %49 : vector<1x1x128xf32> to vector<1x128xf32>
    %cst_26 = arith.constant dense<0.000000e+00> : vector<128xf32>
    %51 = vector.multi_reduction <add>, %30, %cst_26 [0] : vector<32x128xf32> to vector<128xf32>
    %52 = vector.shape_cast %51 : vector<128xf32> to vector<1x128xf32>
    %53 = arith.addf %50, %52 : vector<1x128xf32>
    %c0_27 = arith.constant 0 : index
    %c2_28 = arith.constant 2 : index
    %c0_29 = arith.constant 0 : index
    %54 = vector.load %arg5[%c0_27, %c2_28, %c0_29] : memref<1x3x128xf32, #tpu.memory_space<vmem>>, vector<1x1x128xf32>
    %55 = vector.shape_cast %54 : vector<1x1x128xf32> to vector<1x128xf32>
    %56 = vector.shape_cast %53 : vector<1x128xf32> to vector<1x1x128xf32>
    tpu.vector_store %arg5[%c0_27, %c2_28, %c0_29], %56 {strides = array<i32>} : memref<1x3x128xf32, #tpu.memory_space<vmem>>, vector<1x1x128xf32>,
    return
  }
  func.func @transform_0(%arg0: i32, %arg1: i32) -> (i32, i32, i32) {
    %c0_i32 = arith.constant 0 : i32
    %c0_i32_0 = arith.constant 0 : i32
    return %arg0, %arg1, %c0_i32 : i32, i32, i32
  }
  func.func @transform_1(%arg0: i32, %arg1: i32) -> (i32, i32, i32) {
    %c0_i32 = arith.constant 0 : i32
    %c0_i32_0 = arith.constant 0 : i32
    return %arg0, %arg1, %c0_i32 : i32, i32, i32
  }
  func.func @transform_2(%arg0: i32, %arg1: i32) -> (i32, i32) {
    %c0_i32 = arith.constant 0 : i32
    %c0_i32_0 = arith.constant 0 : i32
    %c0_i32_1 = arith.constant 0 : i32
    return %c0_i32, %c0_i32_0 : i32, i32
  }
  func.func @transform_3(%arg0: i32, %arg1: i32) -> (i32, i32, i32) {
    %c0_i32 = arith.constant 0 : i32
    %c0_i32_0 = arith.constant 0 : i32
    %c0_i32_1 = arith.constant 0 : i32
    return %arg0, %c0_i32, %c0_i32_0 : i32, i32, i32
  }
}

</mosaic_0001>

<bundles_post_ra>
// kernel: tpu_custom_call.1
= control target key start
LH: loop header
LB: loop body
LE: loop exit
PB: predicated region body
PF: predicated region fallthrough
CT: control target
= control target key end

     0   :  { %8 = vsyncpa [#allocation3], 0  ;;  %s1569_s0 = inlined_call_operand.hbm [shape: bf16[2,32,128], index: 0, kind: input, shape index: {}]   ;;  %s1570_s1 = inlined_call_operand.hbm [shape: bf16[2,32,128], index: 1, kind: input, shape index: {}]   ;;  %s1571_s2 = inlined_call_operand.hbm [shape: bf16[128,256], index: 2, kind: input, shape index: {}]   ;;  %s1572_s3 = inlined_call_operand.vmem [shape: f32[2,3,128], index: 3, kind: output, shape index: {}]  }
   0x1   :  { %10 = vsyncpa [#allocation3 + $0x1], 0 }
   0x2   :  { %11 = vsyncpa [#allocation5], 0 }
   0x3   :  { %13 = vsyncpa [#allocation5 + $0x1], 0  ;;  %s1247_s12 = smov 0   ;;  %s1249_s13 = smov 0  }
   0x4   :  { %s1251_s14 = smov 0   ;;  %s1253_s15 = smov 0  }
   0x5   :  { %s1255_s16 = smov 0   ;;  %s1257_s17 = smov 0  }
   0x6 LB: > { %s1573_s18 = sadd.s32 4294967295, %s1219_s17   ;;  %p53_p0 = scmp.ne.s32.totalorder %s1203_s13, %s1199_s12  ;;  %s1219_s17 = sphi %s1257_s17, %s19_s17   ;;  %s1215_s16 = sphi %s1255_s16, %s1591_s16   ;;  %s1211_s15 = sphi %s1253_s15, %s1590_s15   ;;  %s1207_s14 = sphi %s1251_s14, %s1589_s14   ;;  %s1203_s13 = sphi %s1249_s13, %s1588_s13   ;;  %s1199_s12 = sphi %s1247_s12, %s1587_s12  }
   0x7   : > { %p1279_p1 = scmp.eq.s32.totalorder %s1573_s18, 0  ;;  %p845_p2 = scmp.ge.s32.totalorder %s1219_s17, 1 }
   0x8   : > { %p139_p3 = scmp.lt.s32.totalorder %s1219_s17, 3  ;;  %s150_s23 = sshll.u32 %s1571_s2, 4  ;;  %s151_s23 = int_to_ptr.hbm [resolvable:$true] %s150_s23 }
   0x9   : > { %p1287_p4 = por %p1279_p1, %p53_p0  ;;  %s1221_s25 = smov [#allocation6]  }
   0xa   : > { %p1294_p5 = pnand %p845_p2, %p139_p3  ;;  %s152_s26 = sshll.u32 %s1221_s25, 4  ;;  %s153_s26 = int_to_ptr.vmem [resolvable:$true] %s152_s26 }
   0xb   : > { %s1222_s27 = smov 128   ;;  %s1223_s28 = smov 8  }
   0xc   : > { %p971_p6 = pneg %p1294_p5  ;;  %s31_s29 = sadd.s32 1, %s1215_s16 }
   0xd   : > { %p33_p8 = scmp.ge.s32.totalorder %s31_s29, 2  ;;  %s40_s30 = sadd.s32 1, %s1207_s14 }
   0xe   : > { %p972_p7 = pnand %p971_p6, %p1279_p1  ;;  %p47_p9 = scmp.ne.s32.totalorder %s1207_s14, %s1203_s13 }
   0xf   : > { %p48_p10 = scmp.eq.s32.totalorder %s1219_s17, 0  ;;  %s1593_s29 = smov (%p33_p8, %s31_s29), 0 }
  0x10   : > { %974 = dma.hbm_to_vmem [thread:$0]  (!%p972_p7), %s151_s23, 2048, %s153_s26, [#allocation5], %s1222_s27, %s1222_s27, %s1223_s28  }
  0x11   : > { %p1309_p11 = por %p48_p10, %p47_p9  ;;  %p983_p12 = scmp.lt.s32.totalorder %s1219_s17, 2 }
  0x12   : > { %s35_s5 = ssub.s32 %s1215_s16, %s1593_s29  ;;  %s166_s6 = sand.u32 1, %s1207_s14  }
  0x13   : > { %p38_p13 = scmp.eq.s32.totalorder %s35_s5, 0  ;;  %s848_s7 = sshll.u32 %s166_s6, 4 }
  0x14   : > { %s941_s8 = sshll.u32 %s1215_s16, 4  ;;  %s170_s22 = scalar_lea.vmem [#allocation2], %s848_s7 }
  0x15   : > { %s1319_s9 = scalar_select %p38_p13, %s1207_s14, %s40_s30  }
  0x16   : > { %s177_s12 = scalar_lea.hbm %s1569_s0, %s941_s8  ;;  %s180_s23 = sshll.u32 %s170_s22, 4  ;;  %s181_s23 = int_to_ptr.vmem [resolvable:$true] %s180_s23 }
  0x17   : > { %s178_s21 = sshll.u32 %s177_s12, 4  ;;  %p976_p0 = pnand %p983_p12, %p1309_p11  ;;  %s179_s21 = int_to_ptr.hbm [resolvable:$true] %s178_s21 }
  0x18   : > { %s201_s27 = scalar_lea.hbm %s1570_s1, %s941_s8  ;;  %s167_s28 = scalar_lea.sflag [#allocation3], %s166_s6 }
  0x19   : > { %s1224_s30 = smov 64   ;;  %s1225_s5 = smov 4  }
  0x1a   : > { %978 = dma.hbm_to_vmem [thread:$0]  (!%p976_p0), %s179_s21, 256, %s181_s23, %s167_s28, %s1224_s30, %s1224_s30, %s1225_s5  }
  0x1b   : > { %s202_s18 = sshll.u32 %s201_s27, 4  ;;  %s194_s10 = scalar_lea.vmem [#allocation4], %s848_s7  ;;  %s203_s18 = int_to_ptr.hbm [resolvable:$true] %s202_s18 }
  0x1c   : > { %s204_s11 = sshll.u32 %s194_s10, 4  ;;  %s190_s12 = sand.u32 1, %s1219_s17   ;;  %s205_s11 = int_to_ptr.vmem [resolvable:$true] %s204_s11 }
  0x1d   : > { %s191_s22 = scalar_lea.sflag [#allocation5], %s190_s12  ;;  %216 = sbr.rel (%p1294_p5) target bundleno = 306 (0x132), region = 32 }
  0x1e   : > { %981 = dma.hbm_to_vmem [thread:$0]  (!%p976_p0), %s203_s18, 256, %s205_s11, %s191_s22, %s1224_s30, %s1224_s30, %s1225_s5  }
  0x1f   : > { %s218_s4 = sand.u32 (!%p1294_p5), 1, %s1203_s13  }
  0x20   : > { %s1335_s25 = sshll.u32 (!%p1294_p5), %s218_s4, 4  ;;  %s219_s6 = scalar_lea.sflag (!%p1294_p5), [#allocation3], %s218_s4 }
  0x21   : > { %s222_s8 = scalar_lea.vmem (!%p1294_p5), [#allocation2], %s1335_s25 }
  0x22   : > { %1186 = dma.done.wait (%p1287_p4), %s219_s6, 256  }
  0x23   : > { %1188 = vsyncadd (%p1287_p4), %s219_s6, 4294967040  ;;  %s1578_s7 = sadd.s32 4294967295, %s1219_s17   ;;  %s232_s21 = scalar_lea.vmem [#allocation4], %s1335_s25 }
  0x24   : > { %s228_s18 = sand.u32 1, %s1578_s7  }
  0x25   : > { %s229_s24 = scalar_lea.sflag [#allocation5], %s228_s18 }
  0x26   : > { %1190 = dma.done.wait (%p1287_p4), %s229_s24, 256  }
  0x27   : > { %1192 = vsyncadd (%p1287_p4), %s229_s24, 4294967040 }
  0x28   : > { %1194 = dma.done.wait (%p1279_p1), [#allocation5], 2048  }
  0x29   : > { %1196 = vsyncadd (%p1279_p1), [#allocation5], 4294965248  ;;  %v925_v0 = vld [vmem:[#allocation6 + $0x70] sm:$0xf]  ;;  %v958_v1 = vld [vmem:[#allocation6 + $0x74] sm:$0xf0] }
  0x2a   : > { %v957_v2 = vld [vmem:[#allocation6 + $0x74] sm:$0xf]  ;;  %v926_v3 = vor.u32 %v958_v1, %v925_v0  ;;  %v927_v4 = vld [vmem:[#allocation6 + $0x78] sm:$0xf0]  ;;  %v917_v5 = vld [vmem:[#allocation6 + $0x60] sm:$0xf] }
  0x2b   : > { %v956_v6 = vld [vmem:[#allocation6 + $0x64] sm:$0xf0]  ;;  %v930_v7 = vor.u32 %v957_v2, %v927_v4  ;;  %v955_v8 = vld [vmem:[#allocation6 + $0x64] sm:$0xf]  ;;  %v919_v9 = vld [vmem:[#allocation6 + $0x68] sm:$0xf0] }
  0x2c   : > { %388 = vmatpush.bf16.msra.mxu0 %v926_v3  ;;  %506 = vmatpush.bf16.msra.mxu2 %v926_v3  ;;  %v918_v10 = vor.u32 %v956_v6, %v917_v5  ;;  %v922_v11 = vor.u32 %v955_v8, %v919_v9  ;;  %v909_v12 = vld [vmem:[#allocation6 + $0x50] sm:$0xf]  ;;  %v954_v13 = vld [vmem:[#allocation6 + $0x54] sm:$0xf0]  ;;  %v953_v14 = vld [vmem:[#allocation6 + $0x54] sm:$0xf] }
  0x2d   : > { %407 = vmatpush.bf16.msra.mxu1 %v930_v7  ;;  %525 = vmatpush.bf16.msra.mxu3 %v930_v7  ;;  %v911_v15 = vld [vmem:[#allocation6 + $0x58] sm:$0xf0]  ;;  %v910_v16 = vor.u32 %v954_v13, %v909_v12  ;;  %v901_v18 = vld [vmem:[#allocation6 + $0x40] sm:$0xf]  ;;  %v952_v19 = vld [vmem:[#allocation6 + $0x44] sm:$0xf0] }
  0x2e   : > { %v914_v17 = vor.u32 %v953_v14, %v911_v15  ;;  %v951_v20 = vld [vmem:[#allocation6 + $0x44] sm:$0xf]  ;;  %v903_v21 = vld [vmem:[#allocation6 + $0x48] sm:$0xf0]  ;;  %v902_v22 = vor.u32 %v952_v19, %v901_v18  ;;  %v893_v24 = vld [vmem:[#allocation6 + $0x30] sm:$0xf] }
  0x2f   : > { %v906_v23 = vor.u32 %v951_v20, %v903_v21  ;;  %v950_v25 = vld [vmem:[#allocation6 + $0x34] sm:$0xf0]  ;;  %v949_v26 = vld [vmem:[#allocation6 + $0x34] sm:$0xf]  ;;  %v895_v27 = vld [vmem:[#allocation6 + $0x38] sm:$0xf0] }
  0x30   : > { %389 = vmatpush.bf16.msra.mxu0 %v918_v10  ;;  %507 = vmatpush.bf16.msra.mxu2 %v918_v10  ;;  %v894_v28 = vor.u32 %v950_v25, %v893_v24  ;;  %v898_v29 = vor.u32 %v949_v26, %v895_v27  ;;  %v885_v30 = vld [vmem:[#allocation6 + $0x20] sm:$0xf]  ;;  %v948_v31 = vld [vmem:[#allocation6 + $0x24] sm:$0xf0]  ;;  %v947_v32 = vld [vmem:[#allocation6 + $0x24] sm:$0xf] }
  0x31   : > { %408 = vmatpush.bf16.msra.mxu1 %v922_v11  ;;  %526 = vmatpush.bf16.msra.mxu3 %v922_v11  ;;  %v887_v33 = vld [vmem:[#allocation6 + $0x28] sm:$0xf0]  ;;  %v886_v34 = vor.u32 %v948_v31, %v885_v30  ;;  %v877_v36 = vld [vmem:[#allocation6 + $0x10] sm:$0xf]  ;;  %v946_v37 = vld [vmem:[#allocation6 + $0x14] sm:$0xf0] }
  0x32   : > { %v890_v35 = vor.u32 %v947_v32, %v887_v33  ;;  %v945_v38 = vld [vmem:[#allocation6 + $0x14] sm:$0xf]  ;;  %v879_v39 = vld [vmem:[#allocation6 + $0x18] sm:$0xf0]  ;;  %v878_v40 = vor.u32 %v946_v37, %v877_v36  ;;  %v869_v42 = vld [vmem:[#allocation6] sm:$0xf] }
  0x33   : > { %v882_v41 = vor.u32 %v945_v38, %v879_v39  ;;  %v944_v43 = vld [vmem:[#allocation6 + $0x4] sm:$0xf0]  ;;  %v943_v44 = vld [vmem:[#allocation6 + $0x4] sm:$0xf]  ;;  %v871_v45 = vld [vmem:[#allocation6 + $0x8] sm:$0xf0] }
  0x34   : > { %390 = vmatpush.bf16.msra.mxu0 %v910_v16  ;;  %508 = vmatpush.bf16.msra.mxu2 %v910_v16  ;;  %v870_v46 = vor.u32 %v944_v43, %v869_v42  ;;  %v874_v47 = vor.u32 %v943_v44, %v871_v45  ;;  %v959_v48 = vld [vmem:[%s222_s8] sm:$0xff]  ;;  %v960_v50 = vld [vmem:[%s222_s8 + $0x8] sm:$0xff]  ;;  %p267_p1 = scmp.lt.s32.totalorder %s1211_s15, 1 }
  0x35   : > { %409 = vmatpush.bf16.msra.mxu1 %v914_v17  ;;  %527 = vmatpush.bf16.msra.mxu3 %v914_v17  ;;  %v961_v49 = vld [vmem:[%s232_s21] sm:$0xff]  ;;  %v962_v51 = vld [vmem:[%s232_s21 + $0x8] sm:$0xff] }
  0x36   : > { %s1595_s15 = smov (!%p267_p1, %s1211_s15), 1 }
  0x37   : > { %s858_s19 = sshll.u32 %s1595_s15, 2 }
  0x38   : > { %391 = vmatpush.bf16.msra.mxu0 %v902_v22  ;;  %509 = vmatpush.bf16.msra.mxu2 %v902_v22  ;;  %s1413_s15 = scalar_lea.vmem %s1572_s3, %s858_s19 }
  0x39   : > { %410 = vmatpush.bf16.msra.mxu1 %v906_v23  ;;  %528 = vmatpush.bf16.msra.mxu3 %v906_v23 }
  0x3c   : > { %392 = vmatpush.bf16.msra.mxu0 %v894_v28  ;;  %510 = vmatpush.bf16.msra.mxu2 %v894_v28 }
  0x3d   : > { %411 = vmatpush.bf16.msra.mxu1 %v898_v29  ;;  %529 = vmatpush.bf16.msra.mxu3 %v898_v29 }
  0x40   : > { %393 = vmatpush.bf16.msra.mxu0 %v886_v34  ;;  %511 = vmatpush.bf16.msra.mxu2 %v886_v34 }
  0x41   : > { %412 = vmatpush.bf16.msra.mxu1 %v890_v35  ;;  %530 = vmatpush.bf16.msra.mxu3 %v890_v35 }
  0x44   : > { %394 = vmatpush.bf16.msra.mxu0 %v878_v40  ;;  %512 = vmatpush.bf16.msra.mxu2 %v878_v40 }
  0x45   : > { %413 = vmatpush.bf16.msra.mxu1 %v882_v41  ;;  %531 = vmatpush.bf16.msra.mxu3 %v882_v41 }
  0x48   : > { %395 = vmatpush.bf16.msra.mxu0 %v870_v46  ;;  %513 = vmatpush.bf16.msra.mxu2 %v870_v46 }
  0x49   : > { %414 = vmatpush.bf16.msra.mxu1 %v874_v47  ;;  %532 = vmatpush.bf16.msra.mxu3 %v874_v47 }
  0x4b   : > { %396 = vmatmul.bf16.vlgmr.msra.gmra.mxu0 %v959_v48  ;;  %514 = vmatmul.bf16.vlgmr.msra.gmra.mxu2 %v961_v49 }
  0x4c   : > { %415 = vmatmul.bf16.vlgmr.msra.gmra.mxu1 %v959_v48  ;;  %533 = vmatmul.bf16.vlgmr.msra.gmra.mxu3 %v961_v49 }
  0x5b   : > { %401 = vmatmul.bf16.gmra.mxu0 %v960_v50  ;;  %519 = vmatmul.bf16.gmra.mxu2 %v962_v51 }
  0x5c   : > { %420 = vmatmul.bf16.gmra.mxu1 %v960_v50  ;;  %538 = vmatmul.bf16.gmra.mxu3 %v962_v51 }
  0xc8   : > { %v397_v52 = vpop.f32.mrf.mxu0 }
  0xc9   : > { %v426_v53 = vmul.f32 %v397_v52, %v397_v52  ;;  %v416_v54 = vpop.f32.mrf.mxu1 }
  0xca   : > { %v430_v55 = vmul.f32 %v416_v54, %v416_v54 }
  0xcc   : > { %v1361_v56 = vadd.f32 %v430_v55, %v426_v53 }
  0xce   : > { %1039 = vrsqrt.f32 %v1361_v56  ;;  %v515_v57 = vpop.f32.mrf.mxu2  ;;  %vm445_vm2 = vcmp.eq.f32.partialorder %v1361_v56, inf  ;;  %vm447_vm3 = vcmp.eq.f32.partialorder %v1361_v56, 0.0 }
  0xcf   : > { %v544_v58 = vmul.f32 %v515_v57, %v515_v57  ;;  %v534_v59 = vpop.f32.mrf.mxu3 }
  0xd0   : > { %v548_v60 = vmul.f32 %v534_v59, %v534_v59  ;;  %v399_v61 = vpop.f32.mrf.mxu0 }
  0xd1   : > { %v427_v62 = vmul.f32 %v399_v61, %v399_v61  ;;  %v418_v63 = vpop.f32.mrf.mxu1 }
  0xd2   : > { %v552_v0 = vadd.f32 %v548_v60, %v544_v58  ;;  %v431_v1 = vmul.f32 %v418_v63, %v418_v63  ;;  %v448_v63 = vand.u32 2147483648, %v1361_v56 }
  0xd4   : > { %v1040_v2 = vpop.eup %1039  ;;  %1041 = vrsqrt.f32 %v552_v0  ;;  %v1364_v3 = vadd.f32 %v431_v1, %v427_v62  ;;  %vm563_vm0 = vcmp.eq.f32.partialorder %v552_v0, inf  ;;  %v566_v42 = vand.u32 2147483648, %v552_v0 }
  0xd5   : > { %v439_v5 = vmul.f32 %v1040_v2, %v1361_v56  ;;  %vm565_vm1 = vcmp.eq.f32.partialorder %v552_v0, 0.0 }
  0xd6   : > { %v517_v4 = vpop.f32.mrf.mxu2  ;;  %1043 = vrsqrt.f32 %v1364_v3  ;;  %vm457_vm6 = vcmp.eq.f32.partialorder %v1364_v3, inf  ;;  %vm459_vm7 = vcmp.eq.f32.partialorder %v1364_v3, 0.0 }
  0xd7   : > { %v536_v6 = vpop.f32.mrf.mxu3  ;;  %v545_v7 = vmul.f32 %v517_v4, %v517_v4  ;;  %v440_v15 = vmul.f32 %v1040_v2, %v439_v5 }
  0xd8   : > { %v549_v8 = vmul.f32 %v536_v6, %v536_v6  ;;  %v402_v9 = vpop.f32.mrf.mxu0 }
  0xd9   : > { %v428_v10 = vmul.f32 %v402_v9, %v402_v9  ;;  %v421_v11 = vpop.f32.mrf.mxu1  ;;  %v441_v21 = vmul.f32 0.5, %v440_v15 }
  0xda   : > { %v1042_v12 = vpop.eup %1041  ;;  %v1368_v13 = vadd.f32 %v549_v8, %v545_v7  ;;  %v432_v14 = vmul.f32 %v421_v11, %v421_v11 }
  0xdb   : > { %v557_v16 = vmul.f32 %v1042_v12, %v552_v0  ;;  %v442_v33 = vsub.f32 1.5, %v441_v21  ;;  %v460_v21 = vand.u32 2147483648, %v1364_v3 }
  0xdc   : > { %1045 = vrsqrt.f32 %v1368_v13  ;;  %v1371_v17 = vpop.eup %1043  ;;  %v1373_v19 = vadd.f32 %v432_v14, %v428_v10  ;;  %vm575_vm4 = vcmp.eq.f32.partialorder %v1368_v13, inf  ;;  %vm577_vm5 = vcmp.eq.f32.partialorder %v1368_v13, 0.0 }
  0xdd   : > { %v558_v18 = vmul.f32 %v1042_v12, %v557_v16  ;;  %v451_v24 = vmul.f32 %v1371_v17, %v1364_v3  ;;  %v443_v44 = vmul.f32 %v1040_v2, %v442_v33  ;;  %v578_v1 = vand.u32 2147483648, %v1368_v13 }
  0xde   : > { %v520_v20 = vpop.f32.mrf.mxu2  ;;  %1047 = vrsqrt.f32 %v1373_v19  ;;  %vm469_vm8 = vcmp.eq.f32.partialorder %v1373_v19, inf  ;;  %vm471_vm9 = vcmp.eq.f32.partialorder %v1373_v19, 0.0 }
  0xdf   : > { %v559_v22 = vmul.f32 0.5, %v558_v18  ;;  %v539_v23 = vpop.f32.mrf.mxu3  ;;  %v546_v25 = vmul.f32 %v520_v20, %v520_v20  ;;  %v452_v37 = vmul.f32 %v1371_v17, %v451_v24  ;;  %v444_v54 = vmul.f32 %v443_v44, %v1361_v56 }
  0xe0   : > { %v404_v26 = vpop.f32.mrf.mxu0  ;;  %v550_v28 = vmul.f32 %v539_v23, %v539_v23  ;;  %v1226_v20 = vmov 0.0   ;;  %v472_v23 = vand.u32 2147483648, %v1373_v19 }
  0xe1   : > { %v560_v27 = vsub.f32 1.5, %v559_v22  ;;  %v429_v29 = vmul.f32 %v404_v26, %v404_v26  ;;  %v423_v30 = vpop.f32.mrf.mxu1  ;;  %v453_v47 = vmul.f32 0.5, %v452_v37  ;;  %v446_v4 = vsel %vm445_vm2, %v1361_v56, %v444_v54  ;;  %275 = vst [vmem:[%s1413_s15] sm:$0x7] %v1226_v20 }
  0xe2   : > { %v1046_v31 = vpop.eup %1045  ;;  %v433_v32 = vmul.f32 %v423_v30, %v423_v30  ;;  %v1379_v36 = vadd.f32 %v550_v28, %v546_v25  ;;  %v449_v14 = vsel %vm447_vm3, %v448_v63, %v446_v4 }
  0xe3   : > { %v561_v34 = vmul.f32 %v1042_v12, %v560_v27  ;;  %v569_v35 = vmul.f32 %v1046_v31, %v1368_v13  ;;  %v454_v60 = vsub.f32 1.5, %v453_v47  ;;  %v1428_v56 = vadd.f32 1e-07, %v449_v14 }
  0xe4   : > { %v1382_v38 = vadd.f32 %v433_v32, %v429_v29  ;;  %v1048_v39 = vpop.eup %1047  ;;  %1049 = vrsqrt.f32 %v1379_v36  ;;  %vm587_vm10 = vcmp.eq.f32.partialorder %v1379_v36, inf  ;;  %vm589_vm11 = vcmp.eq.f32.partialorder %v1379_v36, 0.0 }
  0xe5   : > { %v562_v40 = vmul.f32 %v561_v34, %v552_v0  ;;  %v570_v41 = vmul.f32 %v1046_v31, %v569_v35  ;;  %v463_v43 = vmul.f32 %v1048_v39, %v1373_v19  ;;  %v455_v8 = vmul.f32 %v1371_v17, %v454_v60 }
  0xe6   : > { %1051 = vrsqrt.f32 %v1382_v38  ;;  %v522_v49 = vpop.f32.mrf.mxu2  ;;  %v590_v29 = vand.u32 2147483648, %v1379_v36  ;;  %vm481_vm12 = vcmp.eq.f32.partialorder %v1382_v38, inf  ;;  %vm483_vm13 = vcmp.eq.f32.partialorder %v1382_v38, 0.0 }
  0xe7   : > { %v564_v45 = vsel %vm563_vm0, %v552_v0, %v562_v40  ;;  %v571_v46 = vmul.f32 0.5, %v570_v41  ;;  %v464_v48 = vmul.f32 %v1048_v39, %v463_v43  ;;  %v541_v50 = vpop.f32.mrf.mxu3  ;;  %v547_v57 = vmul.f32 %v522_v49, %v522_v49 }
  0xe8   : > { %v567_v51 = vsel %vm565_vm1, %v566_v42, %v564_v45  ;;  %v551_v58 = vmul.f32 %v541_v50, %v541_v50 }
  0xe9   : > { %v572_v52 = vsub.f32 1.5, %v571_v46  ;;  %v465_v55 = vmul.f32 0.5, %v464_v48  ;;  %v1393_v59 = vadd.f32 1e-07, %v567_v51  ;;  %v484_v46 = vand.u32 2147483648, %v1382_v38 }
  0xea   : > { %v1050_v53 = vpop.eup %1049  ;;  %v1405_v7 = vadd.f32 %v551_v58, %v547_v57 }
  0xeb   : > { %v573_v61 = vmul.f32 %v1046_v31, %v572_v52  ;;  %v581_v2 = vmul.f32 %v1050_v53, %v1379_v36  ;;  %v466_v5 = vsub.f32 1.5, %v465_v55  ;;  %1053 = vrcp.f32 %v1393_v59 }
  0xec   : > { %v1052_v62 = vpop.eup %1051  ;;  %1055 = vrsqrt.f32 %v1405_v7  ;;  %v608_v35 = vsub.f32 %v1428_v56, %v1393_v59  ;;  %v612_v37 = vadd.f32 %v1393_v59, %v1428_v56  ;;  %v625_v44 = vand.u32 2147483647, %v1393_v59 }
  0xed   : > { %v574_v0 = vmul.f32 %v573_v61, %v1368_v13  ;;  %v475_v6 = vmul.f32 %v1052_v62, %v1382_v38  ;;  %v582_v10 = vmul.f32 %v1050_v53, %v581_v2  ;;  %v467_v16 = vmul.f32 %v1048_v39, %v466_v5 }
  0xee   : > { %vm621_vm14 = vweird.f32 %v1393_v59  ;;  %v689_v55 = vmul.f32 %v608_v35, %v608_v35  ;;  %v705_v57 = vmul.f32 %v612_v37, %v612_v37  ;;  %vm599_vm15 = vcmp.eq.f32.partialorder %v1405_v7, inf }
  0xef   : > { %v576_v9 = vsel %vm575_vm4, %v1368_v13, %v574_v0  ;;  %v476_v12 = vmul.f32 %v1052_v62, %v475_v6  ;;  %v583_v17 = vmul.f32 0.5, %v582_v10  ;;  %v456_v13 = vmul.f32 %v455_v8, %v1364_v3 }
  0xf0   : > { %v579_v11 = vsel %vm577_vm5, %v578_v1, %v576_v9  ;;  %v468_v25 = vmul.f32 %v467_v16, %v1373_v19  ;;  %v602_v14 = vand.u32 2147483648, %v1405_v7  ;;  %vm601_vm3 = vcmp.eq.f32.partialorder %v1405_v7, 0.0 }
  0xf1   : > { %v1418_v15 = vadd.f32 1e-07, %v579_v11  ;;  %v477_v18 = vmul.f32 0.5, %v476_v12  ;;  %v1426_v22 = vpop.eup %1053  ;;  %v584_v26 = vsub.f32 1.5, %v583_v17  ;;  %v458_v28 = vsel %vm457_vm6, %v1364_v3, %v456_v13 }
  0xf2   : > { %v1056_v24 = vpop.eup %1055  ;;  %v617_v31 = vmul.f32 %v1426_v22, %v1393_v59  ;;  %v461_v40 = vsel %vm459_vm7, %v460_v21, %v458_v28  ;;  %v470_v42 = vsel %vm469_vm8, %v1373_v19, %v468_v25  ;;  %v627_v3 = vand.u32 2147483648, %v1393_v59 }
  0xf3   : > { %1057 = vrcp.f32 %v1418_v15  ;;  %v478_v27 = vsub.f32 1.5, %v477_v18  ;;  %v593_v30 = vmul.f32 %v1056_v24, %v1405_v7  ;;  %v585_v32 = vmul.f32 %v1050_v53, %v584_v26 }
  0xf4   : > { %v618_v48 = vsub.f32 1.0, %v617_v31  ;;  %v1464_v51 = vadd.f32 1e-07, %v461_v40  ;;  %v473_v52 = vsel %vm471_vm9, %v472_v23, %v470_v42  ;;  %v640_v1 = vand.u32 2147483647, %v1418_v15 }
  0xf5   : > { %v479_v33 = vmul.f32 %v1052_v62, %v478_v27  ;;  %v594_v39 = vmul.f32 %v1056_v24, %v593_v30  ;;  %v586_v43 = vmul.f32 %v585_v32, %v1379_v36  ;;  %v1482_v0 = vadd.f32 1e-07, %v473_v52 }
  0xf6   : > { %v609_v61 = vsub.f32 %v1464_v51, %v1418_v15  ;;  %v613_v62 = vadd.f32 %v1418_v15, %v1464_v51  ;;  %v619_v63 = vmul.f32 %v1426_v22, %v618_v48  ;;  %v642_v2 = vand.u32 2147483648, %v1418_v15 }
  0xf7   : > { %v480_v45 = vmul.f32 %v479_v33, %v1382_v38  ;;  %v595_v47 = vmul.f32 0.5, %v594_v39  ;;  %v588_v50 = vsel %vm587_vm10, %v1379_v36, %v586_v43  ;;  %vm622_vm1 = vweird.f32 %v1426_v22 }
  0xf8   : > { %v591_v53 = vsel %vm589_vm11, %v590_v29, %v588_v50  ;;  %v690_v10 = vmul.f32 %v609_v61, %v609_v61  ;;  %v706_v11 = vmul.f32 %v613_v62, %v613_v62  ;;  %v620_v16 = vadd.f32 %v1426_v22, %v619_v63  ;;  %vm1524_vm7 = vmor %vm621_vm14, %vm622_vm1 }
  0xf9   : > { %v1442_v34 = vpop.eup %1057  ;;  %v596_v54 = vsub.f32 1.5, %v595_v47  ;;  %v1472_v60 = vadd.f32 1e-07, %v591_v53  ;;  %v482_v19 = vsel %vm481_vm12, %v1382_v38, %v480_v45  ;;  %vm636_vm2 = vweird.f32 %v1418_v15 }
  0xfa   : > { %v632_v41 = vmul.f32 %v1442_v34, %v1418_v15  ;;  %vm637_vm0 = vweird.f32 %v1442_v34  ;;  %v485_v9 = vsel %vm483_vm13, %v484_v46, %v482_v19  ;;  %vm1503_vm4 = vcmp.eq.f32.partialorder %v625_v44, 8.507059e+37 }
  0xfb   : > { %v597_v36 = vmul.f32 %v1056_v24, %v596_v54  ;;  %1059 = vrcp.f32 %v1472_v60  ;;  %v610_v6 = vsub.f32 %v1482_v0, %v1472_v60  ;;  %v614_v8 = vadd.f32 %v1472_v60, %v1482_v0  ;;  %vm1509_vm5 = vmor %vm636_vm2, %vm637_vm0 }
  0xfc   : > { %v633_v49 = vsub.f32 1.0, %v632_v41  ;;  %vm1513_vm6 = vcmp.eq.f32.partialorder %v640_v1, 8.507059e+37  ;;  %v1517_v13 = vadd.f32 1e-07, %v485_v9  ;;  %v643_v26 = vor.u32 1.1754944e-38, %v642_v2 }
  0xfd   : > { %v598_v4 = vmul.f32 %v597_v36, %v1405_v7  ;;  %v691_v21 = vmul.f32 %v610_v6, %v610_v6  ;;  %v707_v23 = vmul.f32 %v614_v8, %v614_v8  ;;  %v693_v27 = vadd.f32 %v690_v10, %v689_v55  ;;  %v688_v9 = vld [vmem:[%s1413_s15] sm:$0x1]  ;;  %v704_v10 = vld [vmem:[%s1413_s15 + $0x1] sm:$0x1] }
  0xfe   : > { %v634_v58 = vmul.f32 %v1442_v34, %v633_v49  ;;  %v709_v28 = vadd.f32 %v706_v11, %v705_v57  ;;  %v624_v30 = vsel %vm1524_vm7, %v1426_v22, %v620_v16  ;;  %v628_v33 = vor.u32 1.1754944e-38, %v627_v3 }
  0xff   : > { %v600_v12 = vsel %vm599_vm15, %v1405_v7, %v598_v4  ;;  %v657_v35 = vand.u32 2147483648, %v1472_v60  ;;  %v694_v37 = vadd.f32 %v693_v27, %v691_v21  ;;  %v655_v43 = vand.u32 2147483647, %v1472_v60 }
 0x100   : > { %v635_v5 = vadd.f32 %v1442_v34, %v634_v58  ;;  %v603_v20 = vsel %vm601_vm3, %v602_v14, %v600_v12  ;;  %v710_v39 = vadd.f32 %v709_v28, %v707_v23  ;;  %v629_v42 = vsel %vm1503_vm4, %v628_v33, %v624_v30 }
 0x101   : > { %v1060_v15 = vpop.eup %1059  ;;  %v607_v24 = vadd.f32 1e-07, %v603_v20  ;;  %vm651_vm9 = vweird.f32 %v1472_v60  ;;  %v630_v3 = vmul.f32 %v629_v42, %v1428_v56  ;;  %v658_v49 = vor.u32 1.1754944e-38, %v657_v35  ;;  %v720_v35 = vld [vmem:[%s1413_s15 + $0x2] sm:$0x1] }
 0x102   : > { %v639_v7 = vsel %vm1509_vm5, %v1442_v34, %v635_v5  ;;  %v647_v29 = vmul.f32 %v1060_v15, %v1472_v60  ;;  %vm652_vm8 = vweird.f32 %v1060_v15  ;;  %vm656_vm11 = vcmp.eq.f32.partialorder %v655_v43, 8.507059e+37 }
 0x103   : > { %v611_v31 = vsub.f32 %v1517_v13, %v607_v24  ;;  %v615_v32 = vadd.f32 %v607_v24, %v1517_v13  ;;  %1061 = vrcp.f32 %v607_v24  ;;  %v644_v59 = vsel %vm1513_vm6, %v643_v26, %v639_v7  ;;  %vm653_vm10 = vmor %vm651_vm9, %vm652_vm8 }
 0x104   : > { %v648_v34 = vsub.f32 1.0, %v647_v29  ;;  %v645_v46 = vmul.f32 %v644_v59, %v1464_v51  ;;  %v672_v62 = vand.u32 2147483648, %v607_v24  ;;  %v670_v36 = vand.u32 2147483647, %v607_v24 }
 0x105   : > { %v692_v40 = vmul.f32 %v611_v31, %v611_v31  ;;  %v708_v41 = vmul.f32 %v615_v32, %v615_v32  ;;  %vm666_vm13 = vweird.f32 %v607_v24 }
 0x106   : > { %v649_v22 = vmul.f32 %v1060_v15, %v648_v34  ;;  %1063 = vlog2.f32 %v645_v46  ;;  %v673_v4 = vor.u32 1.1754944e-38, %v672_v62  ;;  %vm671_vm15 = vcmp.eq.f32.partialorder %v670_v36, 8.507059e+37 }
 0x107   : > { %v695_v44 = vadd.f32 %v694_v37, %v692_v40  ;;  %v711_v45 = vadd.f32 %v710_v39, %v708_v41  ;;  %1065 = vlog2.f32 %v630_v3 }
 0x108   : > { %v650_v47 = vadd.f32 %v1060_v15, %v649_v22 }
 0x109   : > { %v1062_v48 = vpop.eup %1061  ;;  %v696_v50 = vrot.slane %v695_v44, 4  ;;  %v712_v52 = vrot.slane %v711_v45, 4 }
 0x10a   : > { %v654_v53 = vsel %vm653_vm10, %v1060_v15, %v650_v47  ;;  %v662_v54 = vmul.f32 %v1062_v48, %v607_v24  ;;  %vm667_vm12 = vweird.f32 %v1062_v48 }
 0x10b   : > { %v659_v55 = vsel %vm656_vm11, %v658_v49, %v654_v53  ;;  %v697_v57 = vadd.f32 %v696_v50, %v695_v44  ;;  %v713_v58 = vadd.f32 %v712_v52, %v711_v45  ;;  %vm668_vm14 = vmor %vm666_vm13, %vm667_vm12 }
 0x10c   : > { %v660_v61 = vmul.f32 %v659_v55, %v1482_v0  ;;  %v663_v51 = vsub.f32 1.0, %v662_v54  ;;  %v1064_v0 = vpop.eup %1063 }
 0x10d   : > { %v698_v60 = vrot.slane %v697_v57, 2  ;;  %v714_v19 = vrot.slane %v713_v58, 2  ;;  %v1066_v11 = vpop.eup %1065  ;;  %v679_v18 = vmul.f32 0.6931472, %v1064_v0 }
 0x10e   : > { %1067 = vlog2.f32 %v660_v61  ;;  %v664_v56 = vmul.f32 %v1062_v48, %v663_v51  ;;  %v677_v7 = vmul.f32 0.6931472, %v1066_v11 }
 0x10f   : > { %v699_v63 = vadd.f32 %v698_v60, %v697_v57  ;;  %v715_v1 = vadd.f32 %v714_v19, %v713_v58  ;;  %v685_v23 = vand.u32 2147483647, %v679_v18 }
 0x110   : > { %v665_v2 = vadd.f32 %v1062_v48, %v664_v56  ;;  %v684_v24 = vand.u32 2147483647, %v677_v7 }
 0x111   : > { %v700_v5 = vrot.slane %v699_v63, 1  ;;  %v716_v6 = vrot.slane %v715_v1, 1 }
 0x112   : > { %v669_v8 = vsel %vm668_vm14, %v1062_v48, %v665_v2  ;;  %v721_v27 = vadd.f32 %v685_v23, %v684_v24 }
 0x113   : > { %v674_v12 = vsel %vm671_vm15, %v673_v4, %v669_v8  ;;  %v701_v14 = vadd.f32 %v700_v5, %v699_v63  ;;  %v717_v16 = vadd.f32 %v716_v6, %v715_v1 }
 0x114   : > { %v1068_v17 = vpop.eup %1067  ;;  %v675_v38 = vmul.f32 %v674_v12, %v1517_v13 }
 0x115   : > { %v702_v20 = vadd.f32 %v701_v14, %v688_v9  ;;  %v718_v15 = vadd.f32 %v717_v16, %v704_v10  ;;  %v681_v21 = vmul.f32 0.6931472, %v1068_v17 }
 0x116   : > { %1069 = vlog2.f32 %v675_v38 }
 0x117   : > { %703 = vst [vmem:[%s1413_s15] sm:$0x1] %v702_v20  ;;  %v686_v25 = vand.u32 2147483647, %v681_v21 }
 0x118   : > { %719 = vst [vmem:[%s1413_s15 + $0x1] sm:$0x1] %v718_v15 }
 0x119   : > { %v722_v29 = vadd.f32 %v721_v27, %v686_v25 }
 0x11c   : > { %v1070_v26 = vpop.eup %1069 }
 0x11d   : > { %v683_v28 = vmul.f32 0.6931472, %v1070_v26 }
 0x11f   : > { %v687_v30 = vand.u32 2147483647, %v683_v28 }
 0x121   : > { %v723_v31 = vadd.f32 %v722_v29, %v687_v30 }
 0x123   : > { %v724_v13 = vrot.slane %v723_v31, 4 }
 0x125   : > { %v725_v32 = vadd.f32 %v724_v13, %v723_v31 }
 0x127   : > { %v726_v33 = vrot.slane %v725_v32, 2 }
 0x129   : > { %v727_v59 = vadd.f32 %v726_v33, %v725_v32 }
 0x12b   : > { %v728_v34 = vrot.slane %v727_v59, 1 }
 0x12d   : > { %v729_v37 = vadd.f32 %v728_v34, %v727_v59 }
 0x12f   : > { %v730_v39 = vadd.f32 %v729_v37, %v720_v35 }
 0x131   : > { %731 = vst [vmem:[%s1413_s15 + $0x2] sm:$0x1] %v730_v39 }
 0x132 PF: > { %s19_s17 = sadd.s32 1, %s1219_s17   ;;  %s1587_s12 = smov %s1203_s13 }
 0x133   : > { %p16_p2 = scmp.ge.s32.totalorder %s19_s17, 4   ;;  %s1588_s13 = smov %s1207_s14 }
 0x134   : > { %s1589_s14 = smov %s1319_s9  ;;  %s1590_s15 = smov %s1215_s16 }
 0x135   : > { %s1591_s16 = smov %s1593_s29  ;;  %18 = sbr.rel (!%p16_p2) target bundleno = 6 (0x6), region = 93 }
 0x13a   :  { %751 = vsyncpa [#allocation3], 1 }
 0x13b   :  { %753 = vsyncpa [#allocation3 + $0x1], 1 }
 0x13c   :  { %754 = vsyncpa [#allocation5], 1 }
 0x13d   :  { %756 = vsyncpa [#allocation5 + $0x1], 1 }

</bundles_post_ra>
